<compile_context>
chip_gen: v7x
topology: tpu7x:2x2x1
jax: 0.10.0
libtpu: 0.0.40
codegen_flags: <defaults>
</compile_context>

<pallas_src>
import math

import jax
import jax.numpy as jnp
from jax.experimental import pallas as pl
from jax.experimental.pallas import tpu as pltpu

EPS = 0.003


def _round_up(x, m):
    return ((x + m - 1) // m) * m


def critic_kernel(s_ref, a_ref,
                  w_s1, b_s1, w_s2, b_s2, w_a1, b_a1,
                  w2_s, w2_a, b_2, w3_row, b_3,
                  out_ref):
    s = s_ref[...]
    a = a_ref[...]

    # state tower: state_dim -> 256 -> 128
    s1 = jnp.maximum(
        jnp.dot(s, w_s1[...], preferred_element_type=jnp.float32) + b_s1[...], 0.0)
    s2 = jnp.maximum(
        jnp.dot(s1, w_s2[...], preferred_element_type=jnp.float32) + b_s2[...], 0.0)

    # action tower: action_dim -> 128
    a1 = jnp.maximum(
        jnp.dot(a, w_a1[...], preferred_element_type=jnp.float32) + b_a1[...], 0.0)

    # relu(concat([s2, a1]) @ W2 + b2) == relu(s2 @ W2_top + a1 @ W2_bot + b2)
    # (concat eliminated; two clean 128-wide MXU operands instead)
    x = jnp.maximum(
        jnp.dot(s2, w2_s[...], preferred_element_type=jnp.float32)
        + jnp.dot(a1, w2_a[...], preferred_element_type=jnp.float32)
        + b_2[...], 0.0)

    # head 128 -> 1: VPU multiply + lane reduction instead of an N=1 MXU matmul
    q = jnp.sum(x * w3_row[...], axis=-1, keepdims=True) + b_3[...]
    out_ref[...] = q.astype(out_ref.dtype)


def critic_forward(state, action, params, *, tile_b=256):
    B, state_dim = state.shape
    action_dim = action.shape[1]

    # Tile size: multiple of 8 sublanes, no larger than (padded) batch.
    tile_b = min(tile_b, max(8, _round_up(B, 8)))
    b_pad = _round_up(B, tile_b)
    if b_pad != B:
        state = jnp.pad(state, ((0, b_pad - B), (0, 0)))
        action = jnp.pad(action, ((0, b_pad - B), (0, 0)))

    # Split W2 into the halves applied to s2 and a1; present W3 as a (1,128) row.
    w2_s = params["w_2"][:128, :]
    w2_a = params["w_2"][128:, :]
    w3_row = params["w_3"].reshape(1, 128)

    args = (state, action,
            params["w_s1"], params["b_s1"],
            params["w_s2"], params["b_s2"],
            params["w_a1"], params["b_a1"],
            w2_s, w2_a, params["b_2"],
            w3_row, params["b_3"])

    def act_spec(feat):
        return pl.BlockSpec((tile_b, feat), lambda i: (i, 0))

    def resident_spec(w):
        # Full-array block, same block index every grid step -> DMA'd once,
        # stays resident in VMEM across the batch loop.
        return pl.BlockSpec(w.shape, lambda i: (0, 0))

    in_specs = ([act_spec(state_dim), act_spec(action_dim)]
                + [resident_spec(w) for w in args[2:]])
    out_spec = pl.BlockSpec((tile_b, 1), lambda i: (i, 0))

    flops = 2 * b_pad * (state_dim * 256 + 256 * 128 + action_dim * 128
                         + 256 * 128 + 128)
    weight_elems = (state_dim * 256 + 256 + 256 * 128 + 128
                    + action_dim * 128 + 128 + 256 * 128 + 128 + 128 + 1)
    bytes_accessed = 4 * (weight_elems + b_pad * (state_dim + action_dim + 1))

    out = pl.pallas_call(
        critic_kernel,
        out_shape=jax.ShapeDtypeStruct((b_pad, 1), jnp.float32),
        grid=(pl.cdiv(b_pad, tile_b),),
        in_specs=in_specs,
        out_specs=out_spec,
        compiler_params=pltpu.CompilerParams(
            dimension_semantics=("parallel",)),
        cost_estimate=pl.CostEstimate(
            flops=flops, transcendentals=0, bytes_accessed=bytes_accessed),
    )(*args)
    return out[:B] if b_pad != B else out


def _uniform(key, shape, bound):
    return jax.random.uniform(key, shape, jnp.float32, minval=-bound, maxval=bound)


def init_critic_params(key, state_dim, action_dim):
    ks = jax.random.split(key, 10)

    # para_init: v = 1/sqrt(size[0]) where size = (out_features, in_features)
    # PyTorch default Linear bias init: uniform(+-1/sqrt(in_features))
    def linear(kw, kb, in_f, out_f, w_bound=None):
        wb = w_bound if w_bound is not None else 1.0 / math.sqrt(out_f)
        bb = 1.0 / math.sqrt(in_f)
        w = _uniform(kw, (out_f, in_f), wb).T          # stored transposed: (in, out)
        b = _uniform(kb, (1, out_f), bb)
        return w, b

    w_s1, b_s1 = linear(ks[0], ks[1], state_dim, 256)
    w_s2, b_s2 = linear(ks[2], ks[3], 256, 128)
    w_a1, b_a1 = linear(ks[4], ks[5], action_dim, 128)
    w_2,  b_2  = linear(ks[6], ks[7], 256, 128)
    w_3,  b_3  = linear(ks[8], ks[9], 128, 1, w_bound=EPS)
    return dict(w_s1=w_s1, b_s1=b_s1, w_s2=w_s2, b_s2=b_s2,
                w_a1=w_a1, b_a1=b_a1, w_2=w_2, b_2=b_2, w_3=w_3, b_3=b_3)


def critic_reference(state, action, p):
    relu = lambda z: jnp.maximum(z, 0.0)
    s1 = relu(state @ p["w_s1"] + p["b_s1"])
    s2 = relu(s1 @ p["w_s2"] + p["b_s2"])
    a1 = relu(action @ p["w_a1"] + p["b_a1"])
    x = jnp.concatenate([s2, a1], axis=1)
    x = relu(x @ p["w_2"] + p["b_2"])
    return x @ p["w_3"] + p["b_3"]


if __name__ == "__main__":
    B, STATE_DIM, ACTION_DIM = 2, 32, 8
    key = jax.random.PRNGKey(0)
    k_p, k_s, k_a = jax.random.split(key, 3)

    params = init_critic_params(k_p, STATE_DIM, ACTION_DIM)
    state = jax.random.normal(k_s, (B, STATE_DIM), jnp.float32)
    action = jax.random.normal(k_a, (B, ACTION_DIM), jnp.float32)

    q = critic_forward(state, action, params)
    q = jax.block_until_ready(q)

    q_ref = critic_reference(state, action, params)
    assert q.shape == (B, 1), q.shape
    assert jnp.allclose(q, q_ref, atol=1e-4, rtol=1e-4), (q, q_ref)

    print("KERNEL_OK")
</pallas_src>

<mosaic_0001>
module attributes {stable_mosaic.version = 11 : i64} {
  func.func @critic_kernel(%arg0: i32, %arg1: memref<8x32xf32, #tpu.memory_space<vmem>>, %arg2: memref<8x8xf32, #tpu.memory_space<vmem>>, %arg3: memref<32x256xf32, #tpu.memory_space<vmem>>, %arg4: memref<1x256xf32, #tpu.memory_space<vmem>>, %arg5: memref<256x128xf32, #tpu.memory_space<vmem>>, %arg6: memref<1x128xf32, #tpu.memory_space<vmem>>, %arg7: memref<8x128xf32, #tpu.memory_space<vmem>>, %arg8: memref<1x128xf32, #tpu.memory_space<vmem>>, %arg9: memref<128x128xf32, #tpu.memory_space<vmem>>, %arg10: memref<128x128xf32, #tpu.memory_space<vmem>>, %arg11: memref<1x128xf32, #tpu.memory_space<vmem>>, %arg12: memref<1x128xf32, #tpu.memory_space<vmem>>, %arg13: memref<1x1xf32, #tpu.memory_space<vmem>>, %arg14: memref<8x1xf32, #tpu.memory_space<vmem>>) attributes {dimension_semantics = [#tpu.dimension_semantics<parallel>], iteration_bounds = array<i64: 1>, scalar_prefetch = 0 : i64, scratch_operands = 0 : i64, tpu.core_type = #tpu.core_type<tc>, window_params = [{transform_indices = @transform_0, window_bounds = array<i64: 8, 32>}, {transform_indices = @transform_1, window_bounds = array<i64: 8, 8>}, {pipeline_mode = #tpu.pipeline_mode<synchronous>, transform_indices = @transform_2, window_bounds = array<i64: 32, 256>}, {pipeline_mode = #tpu.pipeline_mode<synchronous>, transform_indices = @transform_3, window_bounds = array<i64: 1, 256>}, {pipeline_mode = #tpu.pipeline_mode<synchronous>, transform_indices = @transform_4, window_bounds = array<i64: 256, 128>}, {pipeline_mode = #tpu.pipeline_mode<synchronous>, transform_indices = @transform_5, window_bounds = array<i64: 1, 128>}, {pipeline_mode = #tpu.pipeline_mode<synchronous>, transform_indices = @transform_6, window_bounds = array<i64: 8, 128>}, {pipeline_mode = #tpu.pipeline_mode<synchronous>, transform_indices = @transform_7, window_bounds = array<i64: 1, 128>}, {pipeline_mode = #tpu.pipeline_mode<synchronous>, transform_indices = @transform_8, window_bounds = array<i64: 128, 128>}, {pipeline_mode = #tpu.pipeline_mode<synchronous>, transform_indices = @transform_9, window_bounds = array<i64: 128, 128>}, {pipeline_mode = #tpu.pipeline_mode<synchronous>, transform_indices = @transform_10, window_bounds = array<i64: 1, 128>}, {pipeline_mode = #tpu.pipeline_mode<synchronous>, transform_indices = @transform_11, window_bounds = array<i64: 1, 128>}, {pipeline_mode = #tpu.pipeline_mode<synchronous>, transform_indices = @transform_12, window_bounds = array<i64: 1, 1>}, {transform_indices = @transform_13, window_bounds = array<i64: 8, 1>}]} {
    %c0 = arith.constant 0 : index
    %c0_0 = arith.constant 0 : index
    %0 = vector.load %arg1[%c0, %c0_0] : memref<8x32xf32, #tpu.memory_space<vmem>>, vector<8x32xf32>
    %c0_1 = arith.constant 0 : index
    %c0_2 = arith.constant 0 : index
    %1 = vector.load %arg2[%c0_1, %c0_2] : memref<8x8xf32, #tpu.memory_space<vmem>>, vector<8x8xf32>
    %c0_3 = arith.constant 0 : index
    %c0_4 = arith.constant 0 : index
    %2 = vector.load %arg3[%c0_3, %c0_4] : memref<32x256xf32, #tpu.memory_space<vmem>>, vector<32x256xf32>
    %cst = arith.constant dense<0.000000e+00> : vector<8x256xf32>
    %3 = tpu.matmul %0, %2, %cst {dimension_numbers = #tpu.dot_dimension_numbers<[1], [0], [0], [1], [0, 0, 1, 1], [], []>} : vector<8x32xf32>, vector<32x256xf32>, vector<8x256xf32> -> vector<8x256xf32>
    %c0_5 = arith.constant 0 : index
    %c0_6 = arith.constant 0 : index
    %4 = vector.load %arg4[%c0_5, %c0_6] : memref<1x256xf32, #tpu.memory_space<vmem>>, vector<1x256xf32>
    %5 = vector.broadcast %4 : vector<1x256xf32> to vector<8x256xf32>
    %6 = arith.addf %3, %5 : vector<8x256xf32>
    %cst_7 = arith.constant 0.000000e+00 : f32
    %7 = vector.broadcast %cst_7 : f32 to vector<8x256xf32>
    %8 = arith.maximumf %6, %7 : vector<8x256xf32>
    %c0_8 = arith.constant 0 : index
    %c0_9 = arith.constant 0 : index
    %9 = vector.load %arg5[%c0_8, %c0_9] : memref<256x128xf32, #tpu.memory_space<vmem>>, vector<256x128xf32>
    %cst_10 = arith.constant dense<0.000000e+00> : vector<8x128xf32>
    %10 = tpu.matmul %8, %9, %cst_10 {dimension_numbers = #tpu.dot_dimension_numbers<[1], [0], [0], [1], [0, 0, 1, 1], [], []>} : vector<8x256xf32>, vector<256x128xf32>, vector<8x128xf32> -> vector<8x128xf32>
    %c0_11 = arith.constant 0 : index
    %c0_12 = arith.constant 0 : index
    %11 = vector.load %arg6[%c0_11, %c0_12] : memref<1x128xf32, #tpu.memory_space<vmem>>, vector<1x128xf32>
    %12 = vector.broadcast %11 : vector<1x128xf32> to vector<8x128xf32>
    %13 = arith.addf %10, %12 : vector<8x128xf32>
    %cst_13 = arith.constant 0.000000e+00 : f32
    %14 = vector.broadcast %cst_13 : f32 to vector<8x128xf32>
    %15 = arith.maximumf %13, %14 : vector<8x128xf32>
    %c0_14 = arith.constant 0 : index
    %c0_15 = arith.constant 0 : index
    %16 = vector.load %arg7[%c0_14, %c0_15] : memref<8x128xf32, #tpu.memory_space<vmem>>, vector<8x128xf32>
    %cst_16 = arith.constant dense<0.000000e+00> : vector<8x128xf32>
    %17 = tpu.matmul %1, %16, %cst_16 {dimension_numbers = #tpu.dot_dimension_numbers<[1], [0], [0], [1], [0, 0, 1, 1], [], []>} : vector<8x8xf32>, vector<8x128xf32>, vector<8x128xf32> -> vector<8x128xf32>
    %c0_17 = arith.constant 0 : index
    %c0_18 = arith.constant 0 : index
    %18 = vector.load %arg8[%c0_17, %c0_18] : memref<1x128xf32, #tpu.memory_space<vmem>>, vector<1x128xf32>
    %19 = vector.broadcast %18 : vector<1x128xf32> to vector<8x128xf32>
    %20 = arith.addf %17, %19 : vector<8x128xf32>
    %cst_19 = arith.constant 0.000000e+00 : f32
    %21 = vector.broadcast %cst_19 : f32 to vector<8x128xf32>
    %22 = arith.maximumf %20, %21 : vector<8x128xf32>
    %c0_20 = arith.constant 0 : index
    %c0_21 = arith.constant 0 : index
    %23 = vector.load %arg9[%c0_20, %c0_21] : memref<128x128xf32, #tpu.memory_space<vmem>>, vector<128x128xf32>
    %cst_22 = arith.constant dense<0.000000e+00> : vector<8x128xf32>
    %24 = tpu.matmul %15, %23, %cst_22 {dimension_numbers = #tpu.dot_dimension_numbers<[1], [0], [0], [1], [0, 0, 1, 1], [], []>} : vector<8x128xf32>, vector<128x128xf32>, vector<8x128xf32> -> vector<8x128xf32>
    %c0_23 = arith.constant 0 : index
    %c0_24 = arith.constant 0 : index
    %25 = vector.load %arg10[%c0_23, %c0_24] : memref<128x128xf32, #tpu.memory_space<vmem>>, vector<128x128xf32>
    %cst_25 = arith.constant dense<0.000000e+00> : vector<8x128xf32>
    %26 = tpu.matmul %22, %25, %cst_25 {dimension_numbers = #tpu.dot_dimension_numbers<[1], [0], [0], [1], [0, 0, 1, 1], [], []>} : vector<8x128xf32>, vector<128x128xf32>, vector<8x128xf32> -> vector<8x128xf32>
    %27 = arith.addf %24, %26 : vector<8x128xf32>
    %c0_26 = arith.constant 0 : index
    %c0_27 = arith.constant 0 : index
    %28 = vector.load %arg11[%c0_26, %c0_27] : memref<1x128xf32, #tpu.memory_space<vmem>>, vector<1x128xf32>
    %29 = vector.broadcast %28 : vector<1x128xf32> to vector<8x128xf32>
    %30 = arith.addf %27, %29 : vector<8x128xf32>
    %cst_28 = arith.constant 0.000000e+00 : f32
    %31 = vector.broadcast %cst_28 : f32 to vector<8x128xf32>
    %32 = arith.maximumf %30, %31 : vector<8x128xf32>
    %c0_29 = arith.constant 0 : index
    %c0_30 = arith.constant 0 : index
    %33 = vector.load %arg12[%c0_29, %c0_30] : memref<1x128xf32, #tpu.memory_space<vmem>>, vector<1x128xf32>
    %34 = vector.broadcast %33 : vector<1x128xf32> to vector<8x128xf32>
    %35 = arith.mulf %32, %34 : vector<8x128xf32>
    %cst_31 = arith.constant dense<0.000000e+00> : vector<8xf32>
    %36 = vector.multi_reduction <add>, %35, %cst_31 [1] : vector<8x128xf32> to vector<8xf32>
    %37 = vector.shape_cast %36 : vector<8xf32> to vector<8x1xf32>
    %c0_32 = arith.constant 0 : index
    %c0_33 = arith.constant 0 : index
    %38 = vector.load %arg13[%c0_32, %c0_33] : memref<1x1xf32, #tpu.memory_space<vmem>>, vector<1x1xf32>
    %39 = vector.broadcast %38 : vector<1x1xf32> to vector<8x1xf32>
    %40 = arith.addf %37, %39 : vector<8x1xf32>
    %c0_34 = arith.constant 0 : index
    %c0_35 = arith.constant 0 : index
    %41 = vector.load %arg14[%c0_34, %c0_35] : memref<8x1xf32, #tpu.memory_space<vmem>>, vector<8x1xf32>
    tpu.vector_store %arg14[%c0_34, %c0_35], %40 {strides = array<i32>} : memref<8x1xf32, #tpu.memory_space<vmem>>, vector<8x1xf32>,
    return
  }
  func.func @transform_0(%arg0: i32) -> (i32, i32) {
    %c0_i32 = arith.constant 0 : i32
    %c0_i32_0 = arith.constant 0 : i32
    return %arg0, %c0_i32 : i32, i32
  }
  func.func @transform_1(%arg0: i32) -> (i32, i32) {
    %c0_i32 = arith.constant 0 : i32
    %c0_i32_0 = arith.constant 0 : i32
    return %arg0, %c0_i32 : i32, i32
  }
  func.func @transform_2(%arg0: i32) -> (i32, i32) {
    %c0_i32 = arith.constant 0 : i32
    %c0_i32_0 = arith.constant 0 : i32
    %c0_i32_1 = arith.constant 0 : i32
    return %c0_i32, %c0_i32_0 : i32, i32
  }
  func.func @transform_3(%arg0: i32) -> (i32, i32) {
    %c0_i32 = arith.constant 0 : i32
    %c0_i32_0 = arith.constant 0 : i32
    %c0_i32_1 = arith.constant 0 : i32
    return %c0_i32, %c0_i32_0 : i32, i32
  }
  func.func @transform_4(%arg0: i32) -> (i32, i32) {
    %c0_i32 = arith.constant 0 : i32
    %c0_i32_0 = arith.constant 0 : i32
    %c0_i32_1 = arith.constant 0 : i32
    return %c0_i32, %c0_i32_0 : i32, i32
  }
  func.func @transform_5(%arg0: i32) -> (i32, i32) {
    %c0_i32 = arith.constant 0 : i32
    %c0_i32_0 = arith.constant 0 : i32
    %c0_i32_1 = arith.constant 0 : i32
    return %c0_i32, %c0_i32_0 : i32, i32
  }
  func.func @transform_6(%arg0: i32) -> (i32, i32) {
    %c0_i32 = arith.constant 0 : i32
    %c0_i32_0 = arith.constant 0 : i32
    %c0_i32_1 = arith.constant 0 : i32
    return %c0_i32, %c0_i32_0 : i32, i32
  }
  func.func @transform_7(%arg0: i32) -> (i32, i32) {
    %c0_i32 = arith.constant 0 : i32
    %c0_i32_0 = arith.constant 0 : i32
    %c0_i32_1 = arith.constant 0 : i32
    return %c0_i32, %c0_i32_0 : i32, i32
  }
  func.func @transform_8(%arg0: i32) -> (i32, i32) {
    %c0_i32 = arith.constant 0 : i32
    %c0_i32_0 = arith.constant 0 : i32
    %c0_i32_1 = arith.constant 0 : i32
    return %c0_i32, %c0_i32_0 : i32, i32
  }
  func.func @transform_9(%arg0: i32) -> (i32, i32) {
    %c0_i32 = arith.constant 0 : i32
    %c0_i32_0 = arith.constant 0 : i32
    %c0_i32_1 = arith.constant 0 : i32
    return %c0_i32, %c0_i32_0 : i32, i32
  }
  func.func @transform_10(%arg0: i32) -> (i32, i32) {
    %c0_i32 = arith.constant 0 : i32
    %c0_i32_0 = arith.constant 0 : i32
    %c0_i32_1 = arith.constant 0 : i32
    return %c0_i32, %c0_i32_0 : i32, i32
  }
  func.func @transform_11(%arg0: i32) -> (i32, i32) {
    %c0_i32 = arith.constant 0 : i32
    %c0_i32_0 = arith.constant 0 : i32
    %c0_i32_1 = arith.constant 0 : i32
    return %c0_i32, %c0_i32_0 : i32, i32
  }
  func.func @transform_12(%arg0: i32) -> (i32, i32) {
    %c0_i32 = arith.constant 0 : i32
    %c0_i32_0 = arith.constant 0 : i32
    %c0_i32_1 = arith.constant 0 : i32
    return %c0_i32, %c0_i32_0 : i32, i32
  }
  func.func @transform_13(%arg0: i32) -> (i32, i32) {
    %c0_i32 = arith.constant 0 : i32
    %c0_i32_0 = arith.constant 0 : i32
    return %arg0, %c0_i32 : i32, i32
  }
}

</mosaic_0001>

<bundles_post_ra>
// kernel: tpu_custom_call.1
= control target key start
LH: loop header
LB: loop body
LE: loop exit
PB: predicated region body
PF: predicated region fallthrough
CT: control target
= control target key end

     0   :  { %s1252_s0 = inlined_call_operand.hbm [shape: f32[8,32], index: 0, kind: input, shape index: {}]   ;;  %s1253_s1 = inlined_call_operand.hbm [shape: f32[8,8], index: 1, kind: input, shape index: {}]   ;;  %s1254_s2 = inlined_call_operand.hbm [shape: f32[32,256], index: 2, kind: input, shape index: {}]   ;;  %s1255_s3 = inlined_call_operand.vmem [shape: f32[1,256], index: 3, kind: input, shape index: {}]   ;;  %s1256_s4 = inlined_call_operand.hbm [shape: f32[256,128], index: 4, kind: input, shape index: {}]   ;;  %s1257_s5 = inlined_call_operand.vmem [shape: f32[1,128], index: 5, kind: input, shape index: {}]   ;;  %s1258_s6 = inlined_call_operand.vmem [shape: f32[8,128], index: 6, kind: input, shape index: {}]   ;;  %s1259_s7 = inlined_call_operand.vmem [shape: f32[1,128], index: 7, kind: input, shape index: {}]   ;;  %s1260_s8 = inlined_call_operand.hbm [shape: f32[128,128], index: 8, kind: input, shape index: {}]   ;;  %s1261_s9 = inlined_call_operand.hbm [shape: f32[128,128], index: 9, kind: input, shape index: {}]   ;;  %s1262_s10 = inlined_call_operand.vmem [shape: f32[1,128], index: 10, kind: input, shape index: {}]   ;;  %s1263_s11 = inlined_call_operand.vmem [shape: f32[1,128], index: 11, kind: input, shape index: {}]   ;;  %s1264_s12 = inlined_call_operand.<no memory space> [shape: f32[1,1], index: 12, kind: input, shape index: {}]   ;;  %s1265_s13 = inlined_call_operand.vmem [shape: f32[8,1], index: 13, kind: output, shape index: {}]  }
   0x1   :  { %v18_v0 = vstv %s1264_s12 }
   0x2   :  { %19 = vst [vmem:[#allocation2] sm:$0x1] %v18_v0 }
   0x3   :  { %20 = vsyncpa [#allocation4], 0 }
   0x4   :  { %21 = vsyncpa [#allocation6], 0 }
   0x5   :  { %22 = vsyncpa [#allocation9], 0 }
   0x6   :  { %23 = vsyncpa [#allocation12], 0  ;;  %s1019_s27 = smov [#allocation5]   ;;  %s1020_s29 = smov [#allocation8]  }
   0x7   :  { %s40_s28 = sshll.u32 %s1019_s27, 4  ;;  %s63_s30 = sshll.u32 %s1020_s29, 4  ;;  %s41_s28 = int_to_ptr.vmem [resolvable:$true] %s40_s28  ;;  %s1105_s30 = int_to_ptr.vmem [resolvable:$true] %s63_s30 }
   0x8   :  { %s879_s16 = scalar_lea.hbm %s1253_s1, 128 }
   0x9   :  { %p880_p0 = scmp.ne.s32.totalorder %s1253_s1, %s879_s16  ;;  %p883_p1 = scmp.lt.u32.totalorder %s879_s16, %s1253_s1 }
   0xb   :  { %p885_p2 = pnand %p883_p1, %p880_p0 }
   0xd   :  { %888 = shalt.err (!%p885_p2)
}
   0xe   :  { %s889_s20 = scalar_lea.vmem %s41_s28, 128  ;;  %p894_p4 = scmp.lt.s32.totalorder %s41_s28, %s41_s28 }
   0xf   :  { %p890_p3 = scmp.ne.s32.totalorder %s41_s28, %s889_s20  ;;  %p895_p5 = scmp.lt.s32.totalorder %s889_s20, %s889_s20 }
  0x11   :  { %p896_p6 = por %p895_p5, %p894_p4 }
  0x13   :  { %p897_p7 = pnand %p896_p6, %p890_p3 }
  0x15   :  { %900 = shalt.err (!%p897_p7)
}
  0x16   :  { %43 = dma.hbm_to_vmem [thread:$0]  %s1253_s1, 128, %s41_s28, [#allocation6]  }
  0x17   :  { %s901_s25 = scalar_lea.hbm %s1256_s4, 4096 }
  0x18   :  { %p902_p8 = scmp.ne.s32.totalorder %s1256_s4, %s901_s25  ;;  %p905_p9 = scmp.lt.u32.totalorder %s901_s25, %s1256_s4 }
  0x1a   :  { %p907_p10 = pnand %p905_p9, %p902_p8 }
  0x1c   :  { %910 = shalt.err (!%p907_p10)
}
  0x1d   :  { %s911_s15 = scalar_lea.vmem %s1105_s30, 4096  ;;  %p916_p12 = scmp.lt.s32.totalorder %s1105_s30, %s1105_s30 }
  0x1e   :  { %p912_p11 = scmp.ne.s32.totalorder %s1105_s30, %s911_s15  ;;  %p917_p13 = scmp.lt.s32.totalorder %s911_s15, %s911_s15 }
  0x20   :  { %p918_p0 = por %p917_p13, %p916_p12 }
  0x22   :  { %p919_p1 = pnand %p918_p0, %p912_p11 }
  0x24   :  { %922 = shalt.err (!%p919_p1)
}
  0x25   :  { %s1021_s1 = smov 128   ;;  %s1022_s28 = smov 8  }
  0x26   :  { %69 = dma.hbm_to_vmem [thread:$0]  %s1256_s4, 4096, %s1105_s30, [#allocation9], %s1021_s1, %s1021_s1, %s1022_s28  }
  0x27   :  { %s1023_s18 = smov [#allocation3]   ;;  %s1024_s19 = smov [#allocation7]  }
  0x28   :  { %s30_s12 = sshll.u32 %s1023_s18, 4  ;;  %s49_s20 = sshll.u32 %s1024_s19, 4  ;;  %s31_s12 = int_to_ptr.vmem [resolvable:$true] %s30_s12  ;;  %s1139_s20 = int_to_ptr.vmem [resolvable:$true] %s49_s20 }
  0x29   :  { %s923_s23 = scalar_lea.hbm %s1252_s0, 128 }
  0x2a   :  { %p924_p2 = scmp.ne.s32.totalorder %s1252_s0, %s923_s23  ;;  %p927_p3 = scmp.lt.u32.totalorder %s923_s23, %s1252_s0 }
  0x2c   :  { %p929_p4 = pnand %p927_p3, %p924_p2 }
  0x2e   :  { %932 = shalt.err (!%p929_p4)
}
  0x2f   :  { %s933_s4 = scalar_lea.vmem %s31_s12, 128  ;;  %p938_p6 = scmp.lt.s32.totalorder %s31_s12, %s31_s12 }
  0x30   :  { %p934_p5 = scmp.ne.s32.totalorder %s31_s12, %s933_s4  ;;  %p939_p7 = scmp.lt.s32.totalorder %s933_s4, %s933_s4 }
  0x32   :  { %p940_p8 = por %p939_p7, %p938_p6 }
  0x34   :  { %p941_p9 = pnand %p940_p8, %p934_p5 }
  0x36   :  { %944 = shalt.err (!%p941_p9)
}
  0x37   :  { %33 = dma.hbm_to_vmem [thread:$0]  %s1252_s0, 128, %s31_s12, [#allocation4]  }
  0x38   :  { %s945_s16 = scalar_lea.hbm %s1254_s2, 1024 }
  0x39   :  { %p946_p10 = scmp.ne.s32.totalorder %s1254_s2, %s945_s16  ;;  %p949_p11 = scmp.lt.u32.totalorder %s945_s16, %s1254_s2 }
  0x3b   :  { %p951_p12 = pnand %p949_p11, %p946_p10 }
  0x3d   :  { %954 = shalt.err (!%p951_p12)
}
  0x3e   :  { %s955_s22 = scalar_lea.vmem %s1139_s20, 1024  ;;  %p960_p0 = scmp.lt.s32.totalorder %s1139_s20, %s1139_s20 }
  0x3f   :  { %p956_p13 = scmp.ne.s32.totalorder %s1139_s20, %s955_s22  ;;  %p961_p1 = scmp.lt.s32.totalorder %s955_s22, %s955_s22 }
  0x41   :  { %p962_p2 = por %p961_p1, %p960_p0 }
  0x43   :  { %p963_p3 = pnand %p962_p2, %p956_p13 }
  0x45   :  { %966 = shalt.err (!%p963_p3)
}
  0x46   :  { %s1025_s0 = smov 256   ;;  %s1026_s12 = smov 16  }
  0x47   :  { %55 = dma.hbm_to_vmem [thread:$0]  %s1254_s2, 1024, %s1139_s20, [#allocation6], %s1025_s0, %s1025_s0, %s1026_s12  }
  0x48   :  { %s1027_s25 = smov [#allocation10]   ;;  %s1028_s27 = smov [#allocation11]  }
  0x49   :  { %s81_s26 = sshll.u32 %s1027_s25, 4  ;;  %s93_s4 = sshll.u32 %s1028_s27, 4  ;;  %s82_s26 = int_to_ptr.vmem [resolvable:$true] %s81_s26  ;;  %s1170_s4 = int_to_ptr.vmem [resolvable:$true] %s93_s4 }
  0x4a   :  { %s967_s14 = scalar_lea.hbm %s1260_s8, 2048 }
  0x4b   :  { %p968_p4 = scmp.ne.s32.totalorder %s1260_s8, %s967_s14  ;;  %p971_p5 = scmp.lt.u32.totalorder %s967_s14, %s1260_s8 }
  0x4d   :  { %p973_p6 = pnand %p971_p5, %p968_p4 }
  0x4f   :  { %976 = shalt.err (!%p973_p6)
}
  0x50   :  { %s977_s2 = scalar_lea.vmem %s82_s26, 2048  ;;  %p982_p8 = scmp.lt.s32.totalorder %s82_s26, %s82_s26 }
  0x51   :  { %p978_p7 = scmp.ne.s32.totalorder %s82_s26, %s977_s2  ;;  %p983_p9 = scmp.lt.s32.totalorder %s977_s2, %s977_s2 }
  0x53   :  { %p984_p10 = por %p983_p9, %p982_p8 }
  0x55   :  { %p985_p11 = pnand %p984_p10, %p978_p7 }
  0x57   :  { %988 = shalt.err (!%p985_p11)
}
  0x58   :  { %87 = dma.hbm_to_vmem [thread:$0]  %s1260_s8, 2048, %s82_s26, [#allocation9], %s1021_s1, %s1021_s1, %s1022_s28  }
  0x59   :  { %s989_s0 = scalar_lea.hbm %s1261_s9, 2048 }
  0x5a   :  { %p990_p12 = scmp.ne.s32.totalorder %s1261_s9, %s989_s0  ;;  %p993_p13 = scmp.lt.u32.totalorder %s989_s0, %s1261_s9 }
  0x5c   :  { %p995_p0 = pnand %p993_p13, %p990_p12 }
  0x5e   :  { %998 = shalt.err (!%p995_p0)
}
  0x5f   :  { %s999_s27 = scalar_lea.vmem %s1170_s4, 2048  ;;  %p1004_p2 = scmp.lt.s32.totalorder %s1170_s4, %s1170_s4 }
  0x60   :  { %p1000_p1 = scmp.ne.s32.totalorder %s1170_s4, %s999_s27  ;;  %p1005_p3 = scmp.lt.s32.totalorder %s999_s27, %s999_s27 }
  0x62   :  { %p1006_p4 = por %p1005_p3, %p1004_p2 }
  0x64   :  { %p1007_p5 = pnand %p1006_p4, %p1000_p1 }
  0x66   :  { %1010 = shalt.err (!%p1007_p5)
}
  0x67   :  { %99 = dma.hbm_to_vmem [thread:$0]  %s1261_s9, 2048, %s1170_s4, [#allocation12], %s1021_s1, %s1021_s1, %s1022_s28  }
  0x68   :  { %1011 = dma.done.wait [#allocation4], 128  }
  0x69   :  { %1012 = vsyncadd [#allocation4], 4294967168 }
  0x6a   :  { %1013 = dma.done.wait [#allocation6], 1152  }
  0x6b   :  { %1014 = vsyncadd [#allocation6], 4294966144 }
  0x6c   :  { %1015 = dma.done.wait [#allocation9], 6144  }
  0x6d   :  { %1016 = vsyncadd [#allocation9], 4294961152 }
  0x6e   :  { %1017 = dma.done.wait [#allocation12], 2048  }
  0x6f   :  { %1018 = vsyncadd [#allocation12], 4294965248  ;;  %v1029_v1 = vmov 0.0   ;;  %v127_v2 = vld [vmem:[#allocation7 + $0x8] sm:$0xff]  ;;  %v129_v3 = vld [vmem:[#allocation7 + $0x18] sm:$0xff]  ;;  %vm146_vm0 = vcmask 261120  }
  0x70   :  { %214 = vmatprep.mubr.f32.mxu0 %v1029_v1  ;;  %v126_v4 = vld [vmem:[#allocation7] sm:$0xff]  ;;  %v778_v5 = vpack.c.bf16 %v129_v3, %v127_v2  ;;  %v128_v6 = vld [vmem:[#allocation7 + $0x10] sm:$0xff]  ;;  %v131_v7 = vld [vmem:[#allocation7 + $0x28] sm:$0xff]  ;;  %vm341_vm1 = vcmask 64512   ;;  %vm1030_vm2 = vmmov 0   ;;  %vm615_vm3 = vcmask 7168  }
  0x71   :  { %v133_v8 = vld [vmem:[#allocation7 + $0x38] sm:$0xff]  ;;  %v780_v9 = vpack.c.bf16 %v128_v6, %v126_v4  ;;  %v130_v11 = vld [vmem:[#allocation7 + $0x20] sm:$0xff]  ;;  %v132_v12 = vld [vmem:[#allocation7 + $0x30] sm:$0xff]  ;;  %v1031_v4 = vmov 0.0|0.0  }
  0x72   :  { %v782_v10 = vpack.c.bf16 %v133_v8, %v131_v7  ;;  %779 = vmatprep.subr.bf16.mxu0 %v778_v5  ;;  %v239_v13 = vld [vmem:[#allocation8 + $0x80] sm:$0xff]  ;;  %v240_v14 = vld [vmem:[#allocation8 + $0x88] sm:$0xff]  ;;  %v784_v16 = vpack.c.bf16 %v132_v12, %v130_v11  ;;  %v241_v19 = vld [vmem:[#allocation8 + $0x90] sm:$0xff] }
  0x73   :  { %v223_v15 = vld [vmem:[#allocation8] sm:$0xff]  ;;  %781 = vmatpush1.bf16.msra.mxu0 %v780_v9  ;;  %v786_v17 = vpack.c.bf16 %v240_v14, %v239_v13  ;;  %v224_v18 = vld [vmem:[#allocation8 + $0x8] sm:$0xff]  ;;  %v242_v20 = vld [vmem:[#allocation8 + $0x98] sm:$0xff] }
  0x74   :  { %783 = vmatprep.subr.bf16.mxu0 %v782_v10  ;;  %v788_v21 = vpack.c.bf16 %v224_v18, %v223_v15  ;;  %v790_v22 = vpack.c.bf16 %v242_v20, %v241_v19  ;;  %v225_v23 = vld [vmem:[#allocation8 + $0x10] sm:$0xff]  ;;  %v226_v24 = vld [vmem:[#allocation8 + $0x18] sm:$0xff]  ;;  %v243_v25 = vld [vmem:[#allocation8 + $0xa0] sm:$0xff] }
  0x75   :  { %787 = vmatprep.subr.bf16.mxu1 %v786_v17  ;;  %v244_v26 = vld [vmem:[#allocation8 + $0xa8] sm:$0xff]  ;;  %v792_v27 = vpack.c.bf16 %v226_v24, %v225_v23  ;;  %v124_v28 = vld [vmem:[#allocation3] sm:$0xff]  ;;  %v227_v30 = vld [vmem:[#allocation8 + $0x20] sm:$0xff] }
  0x76   :  { %789 = vmatpush3.bf16.msra.mxu1 %v788_v21  ;;  %v794_v29 = vpack.c.bf16 %v244_v26, %v243_v25  ;;  %v228_v31 = vld [vmem:[#allocation8 + $0x28] sm:$0xff]  ;;  %v245_v32 = vld [vmem:[#allocation8 + $0xb0] sm:$0xff]  ;;  %v246_v33 = vld [vmem:[#allocation8 + $0xb8] sm:$0xff]  ;;  %v136_v21 = vlaneseq }
  0x77   :  { %785 = vmatpush1.bf16.msra.mxu0 %v784_v16  ;;  %791 = vmatprep.subr.bf16.mxu1 %v790_v22  ;;  %v796_v34 = vpack.c.bf16 %v228_v31, %v227_v30  ;;  %v798_v35 = vpack.c.bf16 %v246_v33, %v245_v32  ;;  %v229_v36 = vld [vmem:[#allocation8 + $0x30] sm:$0xff]  ;;  %v230_v37 = vld [vmem:[#allocation8 + $0x38] sm:$0xff]  ;;  %v247_v38 = vld [vmem:[#allocation8 + $0xc0] sm:$0xff] }
  0x78   :  { %703 = vmatprep.subr.mxu0 %v1029_v1  ;;  %v248_v39 = vld [vmem:[#allocation8 + $0xc8] sm:$0xff]  ;;  %v800_v40 = vpack.c.bf16 %v230_v37, %v229_v36  ;;  %v231_v42 = vld [vmem:[#allocation8 + $0x40] sm:$0xff]  ;;  %v249_v44 = vld [vmem:[#allocation8 + $0xd0] sm:$0xff]  ;;  %v137_v22 = vshrl.u32 %v136_v21, 7 }
  0x79   :  { %v802_v41 = vpack.c.bf16 %v248_v39, %v247_v38  ;;  %v232_v43 = vld [vmem:[#allocation8 + $0x48] sm:$0xff]  ;;  %v250_v45 = vld [vmem:[#allocation8 + $0xd8] sm:$0xff]  ;;  %v233_v48 = vld [vmem:[#allocation8 + $0x50] sm:$0xff] }
  0x7a   :  { %625 = vmatmul.mubr.msk.f32.vlgmr.msra.gmra.mrb[0].mxu0 %vm146_vm0, %v124_v28  ;;  %793 = vmatpush3.bf16.msra.mxu1 %v792_v27  ;;  %v804_v46 = vpack.c.bf16 %v232_v43, %v231_v42  ;;  %v806_v47 = vpack.c.bf16 %v250_v45, %v249_v44  ;;  %v234_v49 = vld [vmem:[#allocation8 + $0x58] sm:$0xff]  ;;  %v251_v50 = vld [vmem:[#allocation8 + $0xe0] sm:$0xff]  ;;  %v252_v51 = vld [vmem:[#allocation8 + $0xe8] sm:$0xff]  ;;  %v138_v23 = vsub.s32 0, %v137_v22  ;;  %v142_v25 = vsub.s32 1, %v137_v22 }
  0x7b   :  { %795 = vmatprep.subr.bf16.mxu1 %v794_v29  ;;  %v808_v52 = vpack.c.bf16 %v234_v49, %v233_v48  ;;  %v810_v53 = vpack.c.bf16 %v252_v51, %v251_v50  ;;  %v235_v54 = vld [vmem:[#allocation8 + $0x60] sm:$0xff]  ;;  %v236_v55 = vld [vmem:[#allocation8 + $0x68] sm:$0xff]  ;;  %v253_v57 = vld [vmem:[#allocation8 + $0xf0] sm:$0xff]  ;;  %705 = vmatprep.mubr.msk.f32.mxu0 %vm1030_vm2, %v1029_v1 }
  0x7c   :  { %v812_v56 = vpack.c.bf16 %v236_v55, %v235_v54  ;;  %v254_v58 = vld [vmem:[#allocation8 + $0xf8] sm:$0xff]  ;;  %v237_v60 = vld [vmem:[#allocation8 + $0x70] sm:$0xff]  ;;  %v432_v2 = vld [vmem:[#allocation11] sm:$0xff] }
  0x7d   :  { %v814_v59 = vpack.c.bf16 %v254_v58, %v253_v57  ;;  %v238_v61 = vld [vmem:[#allocation8 + $0x78] sm:$0xff]  ;;  %v333_v63 = vld [vmem:[%s1258_s6] sm:$0xff]  ;;  %v436_v9 = vld [vmem:[#allocation11 + $0x20] sm:$0xff] }
  0x7e   :  { %797 = vmatpush3.bf16.msra.mxu1 %v796_v34  ;;  %v816_v62 = vpack.c.bf16 %v238_v61, %v237_v60  ;;  %704 = vmatpush3.msra.mxu0 %v333_v63  ;;  %v125_v0 = vld [vmem:[#allocation5] sm:$0xff]  ;;  %v433_v3 = vld [vmem:[#allocation11 + $0x8] sm:$0xff]  ;;  %v434_v6 = vld [vmem:[#allocation11 + $0x10] sm:$0xff] }
  0x7f   :  { %799 = vmatprep.subr.bf16.mxu1 %v798_v35  ;;  %818 = vmatprep.subr.bf16.mxu0 %v1031_v4  ;;  %v819_v5 = vpack.c.bf16 %v433_v3, %v432_v2  ;;  %v435_v7 = vld [vmem:[#allocation11 + $0x18] sm:$0xff]  ;;  %v437_v10 = vld [vmem:[#allocation11 + $0x28] sm:$0xff]  ;;  %v438_v12 = vld [vmem:[#allocation11 + $0x30] sm:$0xff] }
  0x80   :  { %706 = vmatmul.mubr.msk.f32.vlgmr.msra.gmra.mrb[2].mxu0 %vm341_vm1, %v125_v0  ;;  %v822_v8 = vpack.c.bf16 %v435_v7, %v434_v6  ;;  %v825_v11 = vpack.c.bf16 %v437_v10, %v436_v9  ;;  %v439_v13 = vld [vmem:[#allocation11 + $0x38] sm:$0xff]  ;;  %v440_v15 = vld [vmem:[#allocation11 + $0x40] sm:$0xff]  ;;  %v441_v16 = vld [vmem:[#allocation11 + $0x48] sm:$0xff] }
  0x81   :  { %820 = vmatpush3.bf16.msra.mxu0 %v819_v5  ;;  %740 = vmatprep.mubr.msk.f32.mxu0 %vm1030_vm2, %v1029_v1  ;;  %v828_v14 = vpack.c.bf16 %v439_v13, %v438_v12  ;;  %v831_v17 = vpack.c.bf16 %v441_v16, %v440_v15  ;;  %v442_v18 = vld [vmem:[#allocation11 + $0x50] sm:$0xff]  ;;  %v443_v19 = vld [vmem:[#allocation11 + $0x58] sm:$0xff]  ;;  %v416_v31 = vld [vmem:[#allocation10] sm:$0xff] }
  0x82   :  { %801 = vmatpush3.bf16.msra.mxu1 %v800_v40  ;;  %821 = vmatprep.subr.bf16.mxu0 %v1031_v4  ;;  %v834_v20 = vpack.c.bf16 %v443_v19, %v442_v18  ;;  %v134_v24 = vld [vmem:[%s1255_s3] sm:$0x3]  ;;  %v419_v38 = vld [vmem:[#allocation10 + $0x18] sm:$0xff]  ;;  %v420_v40 = vld [vmem:[#allocation10 + $0x20] sm:$0xff] }
  0x83   :  { %803 = vmatprep.subr.bf16.mxu1 %v802_v41  ;;  %v139_v26 = vrot.slane %v134_v24, %v138_v23  ;;  %v143_v27 = vrot.slane %v134_v24, %v142_v25  ;;  %v417_v32 = vld [vmem:[#allocation10 + $0x8] sm:$0xff]  ;;  %v418_v37 = vld [vmem:[#allocation10 + $0x10] sm:$0xff]  ;;  %v423_v44 = vld [vmem:[#allocation10 + $0x38] sm:$0xff] }
  0x84   :  { %v843_v35 = vpack.c.bf16 %v417_v32, %v416_v31  ;;  %v846_v39 = vpack.c.bf16 %v419_v38, %v418_v37  ;;  %v421_v41 = vld [vmem:[#allocation10 + $0x28] sm:$0xff]  ;;  %v422_v43 = vld [vmem:[#allocation10 + $0x30] sm:$0xff]  ;;  %v427_v49 = vld [vmem:[#allocation10 + $0x58] sm:$0xff] }
  0x85   :  { %823 = vmatpush3.bf16.msra.mxu0 %v822_v8  ;;  %v849_v42 = vpack.c.bf16 %v421_v41, %v420_v40  ;;  %v852_v45 = vpack.c.bf16 %v423_v44, %v422_v43  ;;  %v444_v51 = vld [vmem:[#allocation11 + $0x60] sm:$0xff]  ;;  %v429_v55 = vld [vmem:[#allocation10 + $0x68] sm:$0xff]  ;;  %v446_v57 = vld [vmem:[#allocation11 + $0x70] sm:$0xff] }
  0x86   :  { %805 = vmatpush3.bf16.msra.mxu1 %v804_v46  ;;  %824 = vmatprep.subr.bf16.mxu0 %v1031_v4  ;;  %v424_v46 = vld [vmem:[#allocation10 + $0x40] sm:$0xff]  ;;  %v447_v58 = vld [vmem:[#allocation11 + $0x78] sm:$0xff]  ;;  %v626_v7 = vld [vmem:[%s1257_s5] ss:$0 sm:$0xff] }
  0x87   :  { %807 = vmatprep.subr.bf16.mxu1 %v806_v47  ;;  %v425_v47 = vld [vmem:[#allocation10 + $0x48] sm:$0xff]  ;;  %v428_v54 = vld [vmem:[#allocation10 + $0x60] sm:$0xff]  ;;  %v840_v61 = vpack.c.bf16 %v447_v58, %v446_v57  ;;  %v431_v63 = vld [vmem:[#allocation10 + $0x78] sm:$0xff] }
  0x88   :  { %v855_v48 = vpack.c.bf16 %v425_v47, %v424_v46  ;;  %v630_v18 = vld [vmem:[%s1263_s11] ss:$0 sm:$0xff] }
  0x89   :  { %826 = vmatpush3.bf16.msra.mxu0 %v825_v11  ;;  %v631_v21 = vld [vmem:[#allocation2] ss:$0 sm:$0xff] }
  0x8a   :  { %809 = vmatpush3.bf16.msra.mxu1 %v808_v52  ;;  %827 = vmatprep.subr.bf16.mxu0 %v1031_v4  ;;  %v445_v52 = vld [vmem:[#allocation11 + $0x68] sm:$0xff] }
  0x8b   :  { %811 = vmatprep.subr.bf16.mxu1 %v810_v53  ;;  %v837_v53 = vpack.c.bf16 %v445_v52, %v444_v51 }
  0x8d   :  { %829 = vmatpush3.bf16.msra.mxu0 %v828_v14  ;;  %v629_v14 = vld [vmem:[%s1262_s10] ss:$0 sm:$0xff] }
  0x8e   :  { %813 = vmatpush3.bf16.msra.mxu1 %v812_v56  ;;  %830 = vmatprep.subr.bf16.mxu0 %v1031_v4  ;;  %v861_v56 = vpack.c.bf16 %v429_v55, %v428_v54 }
  0x8f   :  { %815 = vmatprep.subr.bf16.mxu1 %v814_v59  ;;  %v627_v59 = vld [vmem:[%s1259_s7] ss:$0 sm:$0xff] }
  0x91   :  { %832 = vmatpush3.bf16.msra.mxu0 %v831_v17 }
  0x92   :  { %817 = vmatpush3.bf16.msra.mxu1 %v816_v62  ;;  %833 = vmatprep.subr.bf16.mxu0 %v1031_v4  ;;  %v430_v62 = vld [vmem:[#allocation10 + $0x70] sm:$0xff] }
  0x93   :  { %842 = vmatprep.subr.bf16.mxu1 %v1031_v4  ;;  %v864_v3 = vpack.c.bf16 %v431_v63, %v430_v62 }
  0x95   :  { %835 = vmatpush3.bf16.msra.mxu0 %v834_v20 }
  0x96   :  { %836 = vmatprep.subr.bf16.mxu0 %v1031_v4 }
  0x99   :  { %838 = vmatpush3.bf16.msra.mxu0 %v837_v53 }
  0x9a   :  { %839 = vmatprep.subr.bf16.mxu0 %v1031_v4 }
  0x9d   :  { %841 = vmatpush3.bf16.msra.mxu0 %v840_v61 }
 0x14d   :  { %v216_v28 = vpop.f32.mrb[0].mxu0 }
 0x14e   :  { %v217_v29 = vadd.f32 %v216_v28, %v139_v26  ;;  %v218_v30 = vpop.f32.mrb[1].mxu0 }
 0x14f   :  { %v219_v33 = vadd.f32 %v218_v30, %v143_v27 }
 0x150   :  { %v221_v36 = vmax.f32 %v217_v29, 0.0 }
 0x151   :  { %v222_v34 = vmax.f32 %v219_v33, 0.0 }
 0x153   :  { %326 = vmatprep.mubr.f32.mxu1 %v222_v34  ;;  %v411_v60 = vpop.f32.mrb[2].mxu0 }
 0x154   :  { %327 = vmatmul.mubr.f32.vlgmr.msra.gmra.mrb[0].mxu1 %v221_v36  ;;  %v412_v0 = vadd.f32 %v627_v59, %v411_v60  ;;  %v707_v2 = vpop.f32.mrb[3].mxu0 }
 0x155   :  { %844 = vmatpush3.bf16.msra.mxu1 %v843_v35  ;;  %775 = vmatprep.mubr.msk.f32.mxu1 %vm1030_vm2, %v1029_v1  ;;  %v426_v1 = vld [vmem:[#allocation10 + $0x50] sm:$0xff] }
 0x156   :  { %845 = vmatprep.subr.bf16.mxu1 %v1031_v4  ;;  %v858_v50 = vpack.c.bf16 %v427_v49, %v426_v1  ;;  %v415_v5 = vmax.f32 %v412_v0, 0.0 }
 0x158   :  { %741 = vmatmul.mubr.f32.vlgmr.msra.gmra.mrb[4].mxu0 %v415_v5 }
 0x159   :  { %847 = vmatpush3.bf16.msra.mxu1 %v846_v39 }
 0x15a   :  { %848 = vmatprep.subr.bf16.mxu1 %v1031_v4 }
 0x15d   :  { %850 = vmatpush3.bf16.msra.mxu1 %v849_v42 }
 0x15e   :  { %851 = vmatprep.subr.bf16.mxu1 %v1031_v4 }
 0x161   :  { %853 = vmatpush3.bf16.msra.mxu1 %v852_v45 }
 0x162   :  { %854 = vmatprep.subr.bf16.mxu1 %v1031_v4 }
 0x165   :  { %856 = vmatpush3.bf16.msra.mxu1 %v855_v48 }
 0x166   :  { %857 = vmatprep.subr.bf16.mxu1 %v1031_v4 }
 0x169   :  { %859 = vmatpush3.bf16.msra.mxu1 %v858_v50 }
 0x16a   :  { %860 = vmatprep.subr.bf16.mxu1 %v1031_v4 }
 0x16d   :  { %862 = vmatpush3.bf16.msra.mxu1 %v861_v56 }
 0x16e   :  { %863 = vmatprep.subr.bf16.mxu1 %v1031_v4 }
 0x171   :  { %865 = vmatpush3.bf16.msra.mxu1 %v864_v3 }
 0x227   :  { %v664_v6 = vpop.f32.mrb[0].mxu1 }
 0x228   :  { %v665_v8 = vpop.f32.mrb[1].mxu1 }
 0x229   :  { %v666_v9 = vadd.f32 %v665_v8, %v664_v6 }
 0x22b   :  { %v329_v10 = vadd.f32 %v666_v9, %v626_v7  ;;  %v514_v4 = vpop.f32.mrb[4].mxu0 }
 0x22c   :  { %v742_v12 = vpop.f32.mrb[5].mxu0 }
 0x22d   :  { %v332_v11 = vmax.f32 %v329_v10, 0.0 }
 0x22f   :  { %776 = vmatmul.mubr.f32.vlgmr.msra.gmra.mrb[2].mxu1 %v332_v11 }
 0x302   :  { %v584_v13 = vpop.f32.mrb[2].mxu1 }
 0x303   :  { %v585_v15 = vadd.f32 %v584_v13, %v514_v4  ;;  %v777_v16 = vpop.f32.mrb[3].mxu1 }
 0x305   :  { %v595_v17 = vadd.f32 %v629_v14, %v585_v15 }
 0x307   :  { %v596_v19 = vmax.f32 %v595_v17, 0.0 }
 0x309   :  { %v604_v20 = vmul.f32 %v630_v18, %v596_v19 }
 0x30b   :  { %605 = vadd.xlane.f32.xlu0 %v604_v20 }
 0x398   :  { %v606_v22 = vpop.xlane.xlu0 %605 }
 0x399   :  { %v614_v23 = vadd.f32 %v631_v21, %v606_v22 }
 0x39b   :  { %616 = vst.msk [vmem:[%s1265_s13] sm:$0xff] %vm615_vm3, %v614_v23 }
 0x39c   :  { %621 = vsyncpa [#allocation4], 1 }
 0x39d   :  { %622 = vsyncpa [#allocation6], 1 }
 0x39e   :  { %623 = vsyncpa [#allocation9], 1 }
 0x39f   :  { %624 = vsyncpa [#allocation12], 1 }

</bundles_post_ra>
